<compile_context>
chip_gen: v7x
topology: tpu7x:2x2x1
jax: 0.10.0
libtpu: 0.0.40
codegen_flags: <defaults>
</compile_context>

<pallas_src>
import jax
import jax.numpy as jnp
from jax.experimental import pallas as pl
from jax.experimental.pallas import tpu as pltpu


# --------------------------------------------------------------------------
# Kernel (natural (B, F) layout; batch tiled, F never tiled)
# --------------------------------------------------------------------------

def _symbolic_kernel(x_ref, o_ref):
    x = x_ref[...]                                    # (TB, F)
    dt = x.dtype

    # Rule columns, compared in f32 (narrow (TB, 1) slices -> cheap).
    hunger = x[:, 0:1].astype(jnp.float32)
    social = x[:, 1:2].astype(jnp.float32)
    wealth = x[:, 2:3].astype(jnp.float32)

    cond_h = hunger > 0.8                             # rule 1
    s_lt = social < 0.3
    cond_s = jnp.logical_and(~cond_h, s_lt)           # rule 2 (elif)
    cond_w = jnp.logical_and(~(cond_h | s_lt), wealth < 0.2)  # rule 3 (elif)
    identity = ~(cond_h | cond_s | cond_w)            # else branch, (TB, 1)

    # Full tile: identity rows keep x, rule rows become all-zero.
    out = jnp.where(identity, x, jnp.zeros_like(x))
    o_ref[...] = out.astype(o_ref.dtype)

    # Narrow overwrites of the 3 rule columns.  Each cond_* implies ~identity,
    # so out[:, c] is already exactly 0 wherever the corresponding rule fires;
    # adding the 0/1 condition produces the one-hot value.
    o_ref[:, 0:1] = (out[:, 0:1] + cond_h.astype(dt)).astype(o_ref.dtype)
    o_ref[:, 1:2] = (out[:, 1:2] + cond_s.astype(dt)).astype(o_ref.dtype)
    o_ref[:, 2:3] = (out[:, 2:3] + cond_w.astype(dt)).astype(o_ref.dtype)


# --------------------------------------------------------------------------
# Tiling helpers
# --------------------------------------------------------------------------

_SMALL_INPUT_BYTES = 64 * 1024     # below this, skip pallas_call entirely
_TARGET_TILE_BYTES = 2 << 20       # per buffer; 2-in + 2-out double buffers = 8 MiB
_MIN_TILE_BYTES = 512 << 10        # don't shrink tiles below this for step count
_MIN_GRID_STEPS = 8                # soft preference (megacore / pipeline overlap)


def _round_up(n, m):
    return ((n + m - 1) // m) * m


def _sublane_multiple(dtype):
    itemsize = jnp.dtype(dtype).itemsize
    if itemsize >= 4:
        return 8
    if itemsize == 2:
        return 16
    return 32


def _pick_tile_rows(B, F, dtype):
    multiple = _sublane_multiple(dtype)
    if B <= multiple:
        return B                    # block == full batch dim -> always legal
    itemsize = jnp.dtype(dtype).itemsize
    # VMEM footprint per row uses the lane-padded width (last dim pads to 128).
    row_bytes = _round_up(F, 128) * itemsize
    budget_rows = max(multiple,
                      (_TARGET_TILE_BYTES // row_bytes) // multiple * multiple)
    tile = budget_rows
    # Prefer >= _MIN_GRID_STEPS grid steps (v7x megacore sharding + DMA overlap)
    # as long as tiles stay above the per-step-overhead amortization floor.
    steps_rows = max(multiple, _round_up(pl.cdiv(B, _MIN_GRID_STEPS), multiple))
    if steps_rows * row_bytes >= _MIN_TILE_BYTES:
        tile = min(tile, steps_rows)
    # Never exceed the batch itself; tile == B equals the full array dim (legal),
    # tile < B stays a multiple of the sublane granule (legal, ragged tail ok).
    return min(tile, B)


# --------------------------------------------------------------------------
# Wrapper
# --------------------------------------------------------------------------

def symbolic_reasoning(x, *, use_pallas=None, tile_rows=None):
    """x: (B, F) float array. Returns (B, F) with the symbolic rules applied."""
    if x.ndim != 2:
        # TODO(synk): non-2D tensors hit the module's try/except identity
        # fallback via a Python exception; host-side control flow, not ported.
        raise ValueError(f"symbolic_reasoning expects a 2-D input, got {x.shape}")

    B, F = x.shape
    if F < 3:
        # `len(sample) >= 3` guard in the reference: output stays all zeros.
        return jnp.zeros_like(x)

    nbytes = B * F * jnp.dtype(x.dtype).itemsize
    if use_pallas is None:
        use_pallas = nbytes >= _SMALL_INPUT_BYTES
    if not use_pallas:
        # Tiny input: fused elementwise JAX beats kernel-launch overhead.
        return _reference(x)

    if tile_rows is None:
        tile_b = _pick_tile_rows(B, F, x.dtype)
    else:
        m = _sublane_multiple(x.dtype)
        tile_b = min(max(int(tile_rows), m), B)
        if tile_b < B:
            tile_b = max(m, (tile_b // m) * m)

    grid = (pl.cdiv(B, tile_b),)
    return pl.pallas_call(
        _symbolic_kernel,
        out_shape=jax.ShapeDtypeStruct((B, F), x.dtype),
        grid=grid,
        in_specs=[pl.BlockSpec((tile_b, F), lambda i: (i, 0))],
        out_specs=pl.BlockSpec((tile_b, F), lambda i: (i, 0)),
        compiler_params=pltpu.CompilerParams(dimension_semantics=("parallel",)),
    )(x)


# --------------------------------------------------------------------------
# Pure-JAX reference (mirrors the PyTorch per-sample loop); also the fast path
# --------------------------------------------------------------------------

def _reference(x):
    B, F = x.shape
    if F < 3:
        return jnp.zeros_like(x)
    hunger = x[:, 0:1].astype(jnp.float32)
    social = x[:, 1:2].astype(jnp.float32)
    wealth = x[:, 2:3].astype(jnp.float32)
    cond_h = hunger > 0.8
    s_lt = social < 0.3
    cond_s = (~cond_h) & s_lt
    cond_w = (~(cond_h | s_lt)) & (wealth < 0.2)
    identity = ~(cond_h | cond_s | cond_w)
    col = jnp.arange(F)[None, :]
    out = jnp.where(identity, x, jnp.zeros_like(x))
    out = jnp.where(cond_h & (col == 0), jnp.ones_like(x), out)
    out = jnp.where(cond_s & (col == 1), jnp.ones_like(x), out)
    out = jnp.where(cond_w & (col == 2), jnp.ones_like(x), out)
    return out.astype(x.dtype)


# TODO(synk): the non-tensor (dict) `_apply_symbolic_rules` path and the
# try/except identity fallback are host-side Python control flow with no
# Pallas equivalent; only the tensor forward path is implemented.

if __name__ == "__main__":
    key = jax.random.PRNGKey(0)
    k1, k2, k3 = jax.random.split(key, 3)

    # Small shape consistent with the module (batch of "need" feature vectors).
    B, F = 8, 16
    x = jax.random.uniform(k1, (B, F), dtype=jnp.float32)   # values in [0, 1)

    out_auto = symbolic_reasoning(x)                         # tiny -> fused fast path
    out_pallas = symbolic_reasoning(x, use_pallas=True)      # force Pallas kernel
    jax.block_until_ready((out_auto, out_pallas))
    ref = _reference(x)
    assert out_pallas.shape == x.shape and out_pallas.dtype == x.dtype
    assert jnp.array_equal(out_auto, ref), "fast path mismatch vs reference"
    assert jnp.array_equal(out_pallas, ref), "Pallas kernel mismatch vs reference"

    # Multi-step grid with a ragged trailing block (forced small tile).
    B2, F2 = 1000, 32
    x2 = jax.random.uniform(k2, (B2, F2), dtype=jnp.float32)
    out2 = symbolic_reasoning(x2, use_pallas=True, tile_rows=128)
    jax.block_until_ready(out2)
    assert jnp.array_equal(out2, _reference(x2)), "ragged multi-tile mismatch"

    # Wide-feature bf16 path (F >= 128), auto tile and forced multi-tile.
    B3, F3 = 264, 160
    x3 = jax.random.uniform(k3, (B3, F3), dtype=jnp.float32).astype(jnp.bfloat16)
    out3a = symbolic_reasoning(x3, use_pallas=True)
    out3b = symbolic_reasoning(x3, use_pallas=True, tile_rows=64)
    jax.block_until_ready((out3a, out3b))
    ref3 = _reference(x3)
    assert jnp.array_equal(out3a, ref3), "bf16 single-tile mismatch"
    assert jnp.array_equal(out3b, ref3), "bf16 ragged multi-tile mismatch"

    print("KERNEL_OK")
</pallas_src>

<mosaic_0001>
module attributes {stable_mosaic.version = 11 : i64} {
  func.func @_symbolic_kernel(%arg0: i32, %arg1: memref<8x16xf32, #tpu.memory_space<vmem>>, %arg2: memref<8x16xf32, #tpu.memory_space<vmem>>) attributes {dimension_semantics = [#tpu.dimension_semantics<parallel>], iteration_bounds = array<i64: 1>, scalar_prefetch = 0 : i64, scratch_operands = 0 : i64, tpu.core_type = #tpu.core_type<tc>, window_params = [{transform_indices = @transform_0, window_bounds = array<i64: 8, 16>}, {transform_indices = @transform_1, window_bounds = array<i64: 8, 16>}]} {
    %c0 = arith.constant 0 : index
    %c0_0 = arith.constant 0 : index
    %0 = vector.load %arg1[%c0, %c0_0] : memref<8x16xf32, #tpu.memory_space<vmem>>, vector<8x16xf32>
    %1 = vector.extract_strided_slice %0 {offsets = [0, 0], sizes = [8, 1], strides = [1, 1]} : vector<8x16xf32> to vector<8x1xf32>
    %2 = vector.extract_strided_slice %0 {offsets = [0, 1], sizes = [8, 1], strides = [1, 1]} : vector<8x16xf32> to vector<8x1xf32>
    %3 = vector.extract_strided_slice %0 {offsets = [0, 2], sizes = [8, 1], strides = [1, 1]} : vector<8x16xf32> to vector<8x1xf32>
    %cst = arith.constant 8.000000e-01 : f32
    %4 = vector.broadcast %cst : f32 to vector<8x1xf32>
    %5 = arith.cmpf ogt, %1, %4 : vector<8x1xf32>
    %cst_1 = arith.constant 3.000000e-01 : f32
    %6 = vector.broadcast %cst_1 : f32 to vector<8x1xf32>
    %7 = arith.cmpf olt, %2, %6 : vector<8x1xf32>
    %cst_2 = arith.constant dense<true> : vector<8x1xi1>
    %8 = arith.xori %5, %cst_2 : vector<8x1xi1>
    %9 = arith.andi %8, %7 : vector<8x1xi1>
    %10 = arith.ori %5, %7 : vector<8x1xi1>
    %cst_3 = arith.constant dense<true> : vector<8x1xi1>
    %11 = arith.xori %10, %cst_3 : vector<8x1xi1>
    %cst_4 = arith.constant 2.000000e-01 : f32
    %12 = vector.broadcast %cst_4 : f32 to vector<8x1xf32>
    %13 = arith.cmpf olt, %3, %12 : vector<8x1xf32>
    %14 = arith.andi %11, %13 : vector<8x1xi1>
    %15 = arith.ori %5, %9 : vector<8x1xi1>
    %16 = arith.ori %15, %14 : vector<8x1xi1>
    %cst_5 = arith.constant dense<true> : vector<8x1xi1>
    %17 = arith.xori %16, %cst_5 : vector<8x1xi1>
    %cst_6 = arith.constant 0.000000e+00 : f32
    %18 = vector.broadcast %cst_6 : f32 to vector<8x16xf32>
    %19 = vector.shape_cast %17 : vector<8x1xi1> to vector<8x1xi1>
    %20 = vector.broadcast %19 : vector<8x1xi1> to vector<8x16xi1>
    %21 = arith.select %20, %0, %18 : vector<8x16xi1>, vector<8x16xf32>
    %c0_7 = arith.constant 0 : index
    %c0_8 = arith.constant 0 : index
    %22 = vector.load %arg2[%c0_7, %c0_8] : memref<8x16xf32, #tpu.memory_space<vmem>>, vector<8x16xf32>
    tpu.vector_store %arg2[%c0_7, %c0_8], %21 {strides = array<i32>} : memref<8x16xf32, #tpu.memory_space<vmem>>, vector<8x16xf32>,
    %23 = vector.extract_strided_slice %21 {offsets = [0, 0], sizes = [8, 1], strides = [1, 1]} : vector<8x16xf32> to vector<8x1xf32>
    %24 = arith.extui %5 : vector<8x1xi1> to vector<8x1xi32>
    %25 = arith.sitofp %24 : vector<8x1xi32> to vector<8x1xf32>
    %26 = arith.addf %23, %25 : vector<8x1xf32>
    %c0_9 = arith.constant 0 : index
    %c0_10 = arith.constant 0 : index
    %27 = vector.load %arg2[%c0_9, %c0_10] : memref<8x16xf32, #tpu.memory_space<vmem>>, vector<8x1xf32>
    tpu.vector_store %arg2[%c0_9, %c0_10], %26 {strides = array<i32>} : memref<8x16xf32, #tpu.memory_space<vmem>>, vector<8x1xf32>,
    %28 = vector.extract_strided_slice %21 {offsets = [0, 1], sizes = [8, 1], strides = [1, 1]} : vector<8x16xf32> to vector<8x1xf32>
    %29 = arith.extui %9 : vector<8x1xi1> to vector<8x1xi32>
    %30 = arith.sitofp %29 : vector<8x1xi32> to vector<8x1xf32>
    %31 = arith.addf %28, %30 : vector<8x1xf32>
    %c0_11 = arith.constant 0 : index
    %c1 = arith.constant 1 : index
    %32 = vector.load %arg2[%c0_11, %c1] : memref<8x16xf32, #tpu.memory_space<vmem>>, vector<8x1xf32>
    tpu.vector_store %arg2[%c0_11, %c1], %31 {strides = array<i32>} : memref<8x16xf32, #tpu.memory_space<vmem>>, vector<8x1xf32>,
    %33 = vector.extract_strided_slice %21 {offsets = [0, 2], sizes = [8, 1], strides = [1, 1]} : vector<8x16xf32> to vector<8x1xf32>
    %34 = arith.extui %14 : vector<8x1xi1> to vector<8x1xi32>
    %35 = arith.sitofp %34 : vector<8x1xi32> to vector<8x1xf32>
    %36 = arith.addf %33, %35 : vector<8x1xf32>
    %c0_12 = arith.constant 0 : index
    %c2 = arith.constant 2 : index
    %37 = vector.load %arg2[%c0_12, %c2] : memref<8x16xf32, #tpu.memory_space<vmem>>, vector<8x1xf32>
    tpu.vector_store %arg2[%c0_12, %c2], %36 {strides = array<i32>} : memref<8x16xf32, #tpu.memory_space<vmem>>, vector<8x1xf32>,
    return
  }
  func.func @transform_0(%arg0: i32) -> (i32, i32) {
    %c0_i32 = arith.constant 0 : i32
    %c0_i32_0 = arith.constant 0 : i32
    return %arg0, %c0_i32 : i32, i32
  }
  func.func @transform_1(%arg0: i32) -> (i32, i32) {
    %c0_i32 = arith.constant 0 : i32
    %c0_i32_0 = arith.constant 0 : i32
    return %arg0, %c0_i32 : i32, i32
  }
}

</mosaic_0001>

<bundles_post_ra>
// kernel: tpu_custom_call.1
= control target key start
LH: loop header
LB: loop body
LE: loop exit
PB: predicated region body
PF: predicated region fallthrough
CT: control target
= control target key end

     0   :  { %6 = vsyncpa [#allocation3], 0  ;;  %s199_s0 = inlined_call_operand.hbm [shape: f32[8,16], index: 0, kind: input, shape index: {}]   ;;  %s200_s1 = inlined_call_operand.hbm [shape: f32[8,16], index: 1, kind: output, shape index: {}]  }
   0x1   :  { %7 = vsyncpa [#allocation4], 0  ;;  %s149_s6 = smov [#allocation2]   ;;  %s101_s10 = scalar_lea.hbm %s199_s0, 128 }
   0x2   :  { %s14_s7 = sshll.u32 %s149_s6, 4  ;;  %p102_p0 = scmp.ne.s32.totalorder %s199_s0, %s101_s10  ;;  %s15_s7 = int_to_ptr.vmem [resolvable:$true] %s14_s7 }
   0x3   :  { %p105_p1 = scmp.lt.u32.totalorder %s101_s10, %s199_s0 }
   0x5   :  { %p107_p2 = pnand %p105_p1, %p102_p0 }
   0x7   :  { %110 = shalt.err (!%p107_p2)
}
   0x8   :  { %s111_s15 = scalar_lea.vmem %s15_s7, 128  ;;  %p116_p4 = scmp.lt.s32.totalorder %s15_s7, %s15_s7 }
   0x9   :  { %p112_p3 = scmp.ne.s32.totalorder %s15_s7, %s111_s15  ;;  %p117_p5 = scmp.lt.s32.totalorder %s111_s15, %s111_s15 }
   0xb   :  { %p118_p6 = por %p117_p5, %p116_p4 }
   0xd   :  { %p119_p7 = pnand %p118_p6, %p112_p3 }
   0xf   :  { %122 = shalt.err (!%p119_p7)
}
  0x10   :  { %17 = dma.hbm_to_vmem [thread:$0]  %s199_s0, 128, %s15_s7, [#allocation3]  }
  0x11   :  { %145 = dma.done.wait [#allocation3], 128  }
  0x12   :  { %146 = vsyncadd [#allocation3], 4294967168  ;;  %v150_v0 = vmov 0   ;;  %v21_v1 = vld [vmem:[#allocation2] sm:$0xff]  ;;  %s151_s18 = smov 127   ;;  %s152_s19 = smov 126  }
  0x13   :  { %99 = vset.pattern.permute.xlu1 %v150_v0  ;;  %100 = vset.pattern.permute.xlu0 %v150_v0  ;;  %vm23_vm0 = vcmp.lt.f32.partialorder %v21_v1, 0.3  ;;  %vm32_vm1 = vcmp.lt.f32.partialorder %v21_v1, 0.2  ;;  %vm22_vm2 = vcmp.gt.f32.partialorder %v21_v1, 0.8 }
  0x14   :  { %v25_v2 = vsel %vm23_vm0, 1, %v150_v0  ;;  %v33_v3 = vsel %vm32_vm1, 1, %v150_v0  ;;  %vm153_vm3 = vmmov 1   ;;  %v154_v6 = vmov 0.0   ;;  %s155_s0 = smov 2   ;;  %s156_s20 = smov 1  }
  0x15   :  { %26 = vrot.lane.b32.xlu0 %v25_v2, %s151_s18  ;;  %vm24_vm4 = vmxor %vm22_vm2, %vm153_vm3  ;;  %v87_v10 = vsel %vm22_vm2, 1.0, %v154_v6  ;;  %vm47_vm14 = vcmask 130048   ;;  %vm52_vm0 = vcmask 7168   ;;  %s157_s21 = smov [#allocation5]   ;;  %vm61_vm1 = vcmask 15368  }
  0x16   :  { %s78_s22 = sshll.u32 %s157_s21, 4  ;;  %s79_s22 = int_to_ptr.vmem [resolvable:$true] %s78_s22 }
  0x17   :  { %s123_s23 = scalar_lea.vmem %s79_s22, 128  ;;  %p128_p9 = scmp.lt.s32.totalorder %s79_s22, %s79_s22 }
  0x18   :  { %p124_p8 = scmp.ne.s32.totalorder %s79_s22, %s123_s23  ;;  %p129_p10 = scmp.lt.s32.totalorder %s123_s23, %s123_s23 }
  0x19   :  { %34 = vrot.lane.b32.xlu0 %v33_v3, %s152_s19 }
  0x1a   :  { %p130_p11 = por %p129_p10, %p128_p9 }
  0x1c   :  { %p131_p12 = pnand %p130_p11, %p124_p8 }
  0x87   :  { %v27_v4 = vpop.permute.xlu0 %26 }
  0x88   :  { %vm28_vm5 = vcmp.ne.s32.totalorder %v27_v4, 0 }
  0x89   :  { %vm29_vm6 = vmand %vm24_vm4, %vm28_vm5 }
  0x8a   :  { %vm30_vm7 = vmor %vm22_vm2, %vm28_vm5  ;;  %v88_v9 = vsel %vm29_vm6, 1.0, %v154_v6 }
  0x8b   :  { %vm38_vm8 = vmor %vm22_vm2, %vm29_vm6  ;;  %v35_v5 = vpop.permute.xlu0 %34 }
  0x8c   :  { %vm31_vm9 = vmxor %vm30_vm7, %vm153_vm3  ;;  %vm36_vm10 = vcmp.ne.s32.totalorder %v35_v5, 0 }
  0x8d   :  { %vm37_vm11 = vmand %vm31_vm9, %vm36_vm10 }
  0x8e   :  { %v89_v7 = vsel %vm37_vm11, 1.0, %v154_v6  ;;  %vm39_vm12 = vmor %vm38_vm8, %vm37_vm11 }
  0x8f   :  { %66 = vrot.lane.b32.xlu0 %v89_v7, %s155_s0  ;;  %vm40_vm13 = vmxor %vm39_vm12, %vm153_vm3  ;;  %vm70_vm3 = vcmask 23568  }
  0x90   :  { %v41_v8 = vsel %vm40_vm13, 1, %v150_v0 }
  0x91   :  { %43 = vperm.xlu1 %99, %v41_v8  }
  0x95   :  { %57 = vrot.lane.b32.xlu1 %v88_v9, %s156_s20 }
 0x101   :  { %v67_v15 = vpop.permute.xlu0 %66 }
 0x110   :  { %v44_v11 = vpop.permute.xlu1 %43 }
 0x111   :  { %vm45_vm15 = vcmp.eq.s32.totalorder %v44_v11, 1 }
 0x112   :  { %v46_v12 = vsel %vm45_vm15, %v21_v1, 0.0 }
 0x113   :  { %48 = vst.msk [vmem:[#allocation5] sm:$0xff] %vm47_vm14, %v46_v12  ;;  %v51_v13 = vadd.f32 %v87_v10, %v46_v12  ;;  %v69_v17 = vadd.f32 %v67_v15, %v46_v12 }
 0x114   :  { %v58_v14 = vpop.permute.xlu1 %57 }
 0x115   :  { %53 = vst.msk [vmem:[#allocation5] sm:$0xff] %vm52_vm0, %v51_v13  ;;  %v60_v16 = vadd.f32 %v58_v14, %v46_v12 }
 0x117   :  { %62 = vst.msk [vmem:[#allocation5] sm:$0xff] %vm61_vm1, %v60_v16 }
 0x118   :  { %71 = vst.msk [vmem:[#allocation5] sm:$0xff] %vm70_vm3, %v69_v17 }
 0x119   :  { %134 = shalt.err (!%p131_p12)
}
 0x11a   :  { %s135_s26 = scalar_lea.hbm %s200_s1, 128 }
 0x11b   :  { %p136_p13 = scmp.ne.s32.totalorder %s200_s1, %s135_s26  ;;  %p139_p0 = scmp.lt.u32.totalorder %s135_s26, %s200_s1 }
 0x11d   :  { %p141_p1 = pnand %p139_p0, %p136_p13 }
 0x11f   :  { %144 = shalt.err (!%p141_p1)
}
 0x120   :  { %81 = dma.vmem_to_hbm [thread:$0]  %s79_s22, 128, %s200_s1, [#allocation4]  }
 0x121   :  { %147 = dma.done.wait [#allocation4], 128  }
 0x122   :  { %148 = vsyncadd [#allocation4], 4294967168 }
 0x123   :  { %85 = vsyncpa [#allocation3], 1 }
 0x124   :  { %86 = vsyncpa [#allocation4], 1 }

</bundles_post_ra>
